<compile_context>
chip_gen: v7x
topology: tpu7x:2x2x1
jax: 0.10.0
libtpu: 0.0.40
codegen_flags: <defaults>
</compile_context>

<pallas_src>
import functools

import jax
import jax.numpy as jnp
from jax.experimental import pallas as pl
from jax.experimental.pallas import tpu as pltpu


def _round_up(x: int, m: int) -> int:
    return ((x + m - 1) // m) * m


@functools.lru_cache(maxsize=1)
def _tpu_chip_info():
    """Best-effort chip generation / TensorCore count / VMEM capacity query."""
    kind = ""
    try:
        kind = jax.devices()[0].device_kind.lower()
    except Exception:
        pass
    if "v7" in kind or "tpu7" in kind:
        info = {"gen": 7, "tensorcores": 2, "vmem_bytes": 64 << 20, "bf16_elementwise": True}
    elif "v6" in kind or "tpu6" in kind:
        info = {"gen": 6, "tensorcores": 1, "vmem_bytes": 128 << 20, "bf16_elementwise": True}
    elif "v5" in kind:
        info = {"gen": 5, "tensorcores": 1, "vmem_bytes": 128 << 20, "bf16_elementwise": False}
    else:
        info = {"gen": 0, "tensorcores": 1, "vmem_bytes": 64 << 20, "bf16_elementwise": False}
    try:  # refine VMEM capacity if the query API is available
        info["vmem_bytes"] = int(pltpu.get_tpu_info().vmem_capacity_bytes)
    except Exception:
        pass
    return info


def _mlp_policy_kernel(n_layers, ac_dim, compute_dtype, *refs):
    """refs = (obs_ref, w0, b0, ..., w_L, b_L, out_ref); out holds [mean | std]."""
    obs_ref = refs[0]
    param_refs = refs[1:1 + 2 * (n_layers + 1)]
    out_ref = refs[-1]

    x = obs_ref[...]

    # Hidden layers: MXU matmuls with f32 accumulation; bias-add + tanh run in
    # `compute_dtype` (bf16 on v6e/v7x when weights are bf16, f32 otherwise).
    for layer in range(n_layers):
        w = param_refs[2 * layer][...]
        b = param_refs[2 * layer + 1][...]
        y = jnp.dot(x.astype(w.dtype), w, preferred_element_type=jnp.float32)
        x = jnp.tanh(y.astype(compute_dtype) + b.astype(compute_dtype))

    # Output layer (identity activation) -> (TB, 2*ac_dim); math kept in f32.
    w_out = param_refs[2 * n_layers][...]
    b_out = param_refs[2 * n_layers + 1][...]
    y = jnp.dot(x.astype(w_out.dtype), w_out, preferred_element_type=jnp.float32)
    y = y + b_out.astype(jnp.float32)

    # Fused [mean | std]: clamp+exp applied where lane >= ac_dim via a lane mask
    # (no cross-lane slicing at a non-128 boundary).
    col = jax.lax.broadcasted_iota(jnp.int32, y.shape, dimension=1)
    std = jnp.exp(jnp.clip(y, -20.0, 2.0))
    out_ref[...] = jnp.where(col >= ac_dim, std, y).astype(out_ref.dtype)


def _choose_batch_tile(B, batch_tile, chip):
    """Per-grid-step batch tile: multiple of 8, MXU-M (128) aligned when large."""
    if batch_tile is None:
        # Only the obs/out tiles stream per grid step (weights stay resident),
        # so a big tile mostly amortizes the ~0.35 us/step pipeline overhead.
        batch_tile = 1024 if chip["gen"] >= 6 else 512
    if B <= 8:
        return 8
    TB = min(batch_tile, _round_up(B, 8))
    # v7x megacore: keep >= num-TensorCores grid steps so the "parallel" batch
    # axis actually shards across both cores (no-op on single-TC v5e/v6e).
    if chip["tensorcores"] > 1:
        TB = min(TB, max(8, _round_up(pl.cdiv(B, chip["tensorcores"]), 8)))
    if TB >= 128:
        TB = (TB // 128) * 128      # MXU M-tile alignment
    else:
        TB = _round_up(TB, 8)       # f32 sublane alignment
    return TB


def _vmem_limit_bytes(TB, obs_itemsize, ob_dim, out_dim, params, chip, param_mult):
    """Scoped-VMEM budget: resident params + double-buffered IO + activations."""
    param_bytes = sum(int(p.nbytes) for p in params)
    io_tile_bytes = TB * ob_dim * obs_itemsize + TB * out_dim * 4
    widest = max(int(p.shape[-1]) for p in params)
    act_bytes = 2 * TB * widest * 4
    est = param_mult * param_bytes + 2 * io_tile_bytes + act_bytes
    if chip["gen"] == 7:
        cap = 48 << 20        # v7x: 64 MiB physical VMEM -> leave headroom
    elif chip["gen"] == 6:
        cap = 96 << 20        # v6e: 128 MiB physical -> lift above the 32 MiB default
    elif chip["gen"] == 5:
        cap = 32 << 20        # v5e: keep modest
    else:
        cap = min(32 << 20, (int(chip["vmem_bytes"]) * 3) // 4)
    return int(min(max(2 * est, 4 << 20), cap))


def _pallas_forward(obs_in, params, *, ac_dim, n_layers, TB, compute_dtype, chip,
                    single_buffer_params):
    B_pad, ob_dim = obs_in.shape
    out_dim = 2 * ac_dim
    num_blocks = B_pad // TB

    kernel = functools.partial(_mlp_policy_kernel, n_layers, ac_dim, compute_dtype)

    # obs / fused output stream over the batch grid; weights & biases have a
    # constant index_map so they are DMA'd once and stay VMEM-resident.
    in_specs = [pl.BlockSpec((TB, ob_dim), lambda i: (i, 0))]
    for p in params:
        if single_buffer_params:
            # No point double-buffering a block whose index never changes:
            # single-buffer the resident params (halves their VMEM footprint).
            in_specs.append(pl.BlockSpec(p.shape, lambda i: (0, 0),
                                         pipeline_mode=pl.Buffered(1)))
        else:
            in_specs.append(pl.BlockSpec(p.shape, lambda i: (0, 0)))
    out_spec = pl.BlockSpec((TB, out_dim), lambda i: (i, 0))

    # Advisory cost estimate so XLA can overlap this small call with neighbours.
    flops = 0
    transcendentals = 0
    for li in range(n_layers + 1):
        fi, fo = (int(d) for d in params[2 * li].shape)
        flops += 2 * B_pad * fi * fo
        if li < n_layers:
            transcendentals += B_pad * fo          # tanh
    transcendentals += B_pad * out_dim             # exp over the fused output
    bytes_accessed = int(obs_in.nbytes) + sum(int(p.nbytes) for p in params) \
        + B_pad * out_dim * 4

    vmem_limit = _vmem_limit_bytes(
        TB, obs_in.dtype.itemsize, ob_dim, out_dim, params, chip,
        param_mult=1 if single_buffer_params else 2)

    return pl.pallas_call(
        kernel,
        out_shape=jax.ShapeDtypeStruct((B_pad, out_dim), jnp.float32),
        grid=(num_blocks,),
        in_specs=in_specs,
        out_specs=out_spec,
        compiler_params=pltpu.CompilerParams(
            dimension_semantics=("parallel",),
            vmem_limit_bytes=vmem_limit,
        ),
        cost_estimate=pl.CostEstimate(
            flops=flops,
            transcendentals=transcendentals,
            bytes_accessed=bytes_accessed,
        ),
    )(obs_in, *params)


def mlp_policy_forward(obs, params, *, ac_dim, n_layers, batch_tile=None):
    """Run the MLPPolicy forward pass in a single batch-gridded Pallas kernel.

    obs:    (B, ob_dim) float32
    params: flat list [W0, b0, ..., W_out, b_out]; W_i as (in, out), b_i as (1, out).
            Weights may be float32 or bfloat16 (bf16 halves weight HBM traffic).
    Returns (mean, std), each (B, ac_dim) float32, which fully parameterize the
    tanh-squashed Normal action distribution of the original module.
    """
    B, ob_dim = obs.shape
    chip = _tpu_chip_info()

    w_dtype = params[0].dtype
    weights_bf16 = w_dtype == jnp.bfloat16
    # bf16 elementwise (bias-add/tanh) only on chips with a bf16 VPU/EUP path.
    compute_dtype = jnp.bfloat16 if (weights_bf16 and chip["bf16_elementwise"]) else jnp.float32
    # Cast obs to the weight dtype exactly once, in the wrapper: halves streamed
    # obs HBM->VMEM bytes per tile when the weights are bf16.
    obs_in = obs.astype(w_dtype)

    TB = _choose_batch_tile(B, batch_tile, chip)
    num_blocks = pl.cdiv(B, TB)
    B_pad = num_blocks * TB
    if B_pad != B:
        # Pad to a whole number of tiles: every load/store stays a full, unmasked
        # access and the pipeline is uniform (padded rows are discarded below).
        obs_in = jnp.pad(obs_in, ((0, B_pad - B), (0, 0)))

    try:
        fused = _pallas_forward(obs_in, params, ac_dim=ac_dim, n_layers=n_layers,
                                TB=TB, compute_dtype=compute_dtype, chip=chip,
                                single_buffer_params=True)
    except Exception:
        # pl.Buffered(1) not supported by this jax/Mosaic version: fall back to
        # default double-buffered params (still only DMA'd once thanks to the
        # constant index_map).
        fused = _pallas_forward(obs_in, params, ac_dim=ac_dim, n_layers=n_layers,
                                TB=TB, compute_dtype=compute_dtype, chip=chip,
                                single_buffer_params=False)

    mean = fused[:B, :ac_dim]
    std = fused[:B, ac_dim:]
    return mean, std


def pad_params_lane_dense(params, n_layers, lane=128):
    """Losslessly zero-pad hidden widths up to a multiple of 128.

    Padded hidden units see zero weight columns and zero bias -> tanh(0) = 0,
    and the next layer's padded input rows are zero, so the network output is
    unchanged while the in-kernel activations become fully lane-dense
    (unmasked vst, full vregs) instead of using e.g. 32/128 lanes.
    """
    padded = []
    extra_rows = 0                      # padding carried over from the previous layer
    for li in range(n_layers + 1):
        w, b = params[2 * li], params[2 * li + 1]
        _, fan_out = (int(d) for d in w.shape)
        fan_out_pad = _round_up(fan_out, lane) if li < n_layers else fan_out
        padded.append(jnp.pad(w, ((0, extra_rows), (0, fan_out_pad - fan_out))))
        padded.append(jnp.pad(b, ((0, 0), (0, fan_out_pad - fan_out))))
        extra_rows = fan_out_pad - fan_out
    return padded


def init_mlp_params(key, ob_dim, ac_dim, n_layers, layer_size):
    """Deterministic init mimicking nn.Linear default (uniform +/- 1/sqrt(fan_in))."""
    dims = [ob_dim] + [layer_size] * n_layers + [2 * ac_dim]
    params = []
    for i in range(len(dims) - 1):
        fan_in, fan_out = dims[i], dims[i + 1]
        key, wk, bk = jax.random.split(key, 3)
        bound = 1.0 / jnp.sqrt(jnp.float32(fan_in))
        w = jax.random.uniform(wk, (fan_in, fan_out), jnp.float32, -bound, bound)
        b = jax.random.uniform(bk, (1, fan_out), jnp.float32, -bound, bound)
        params += [w, b]
    return params


def mlp_policy_reference(obs, params, *, ac_dim, n_layers):
    """Pure-JAX reference (f32) for correctness check."""
    x = obs
    for layer in range(n_layers):
        w = params[2 * layer].astype(jnp.float32)
        b = params[2 * layer + 1].astype(jnp.float32)
        x = jnp.tanh(x @ w + b)
    w = params[2 * n_layers].astype(jnp.float32)
    b = params[2 * n_layers + 1].astype(jnp.float32)
    y = x @ w + b
    mean, log_std = y[:, :ac_dim], y[:, ac_dim:]
    log_std = jnp.clip(log_std, -20.0, 2.0)
    return mean, jnp.exp(log_std)


if __name__ == "__main__":
    # Small, module-consistent shapes.
    B, ob_dim, ac_dim = 8, 16, 4
    n_layers, layer_size = 2, 32

    key = jax.random.PRNGKey(0)
    key, okey = jax.random.split(key)
    obs = jax.random.normal(okey, (B, ob_dim), jnp.float32)
    params = init_mlp_params(key, ob_dim, ac_dim, n_layers, layer_size)

    # Lossless lane-dense padding of the 32-wide hidden layers up to 128.
    padded_params = pad_params_lane_dense(params, n_layers)

    # f32 path, single block (reference uses the UNPADDED params -> proves
    # the lane-dense padding is lossless).
    mean, std = mlp_policy_forward(obs, padded_params, ac_dim=ac_dim, n_layers=n_layers)
    jax.block_until_ready((mean, std))
    ref_mean, ref_std = mlp_policy_reference(obs, params, ac_dim=ac_dim, n_layers=n_layers)
    assert mean.shape == (B, ac_dim) and std.shape == (B, ac_dim)
    assert jnp.allclose(mean, ref_mean, atol=1e-5, rtol=1e-5)
    assert jnp.allclose(std, ref_std, atol=1e-5, rtol=1e-5)

    # Multi-block grid path (B=64, batch_tile=16 -> 4 grid steps, resident weights).
    B2 = 64
    key, okey2 = jax.random.split(key)
    obs2 = jax.random.normal(okey2, (B2, ob_dim), jnp.float32)
    mean2, std2 = mlp_policy_forward(obs2, padded_params, ac_dim=ac_dim,
                                     n_layers=n_layers, batch_tile=16)
    jax.block_until_ready((mean2, std2))
    rm2, rs2 = mlp_policy_reference(obs2, params, ac_dim=ac_dim, n_layers=n_layers)
    assert jnp.allclose(mean2, rm2, atol=1e-5, rtol=1e-5)
    assert jnp.allclose(std2, rs2, atol=1e-5, rtol=1e-5)

    # Ragged batch (B=50): wrapper pads to a whole number of tiles internally.
    B3 = 50
    obs3 = obs2[:B3]
    mean3, std3 = mlp_policy_forward(obs3, padded_params, ac_dim=ac_dim,
                                     n_layers=n_layers, batch_tile=16)
    jax.block_until_ready((mean3, std3))
    assert jnp.allclose(mean3, rm2[:B3], atol=1e-5, rtol=1e-5)
    assert jnp.allclose(std3, rs2[:B3], atol=1e-5, rtol=1e-5)

    # bf16-weight path: bf16 obs streaming + bf16 elementwise on v6e/v7x
    # (f32 elementwise on v5e); looser tolerance.
    bf16_params = [p.astype(jnp.bfloat16) for p in padded_params]
    mean4, std4 = mlp_policy_forward(obs2, bf16_params, ac_dim=ac_dim,
                                     n_layers=n_layers, batch_tile=16)
    jax.block_until_ready((mean4, std4))
    assert jnp.allclose(mean4, rm2, atol=2e-1, rtol=2e-1)
    assert jnp.allclose(std4, rs2, atol=2e-1, rtol=2e-1)

    print("KERNEL_OK")
</pallas_src>

<mosaic_0001>
module attributes {stable_mosaic.version = 11 : i64} {
  func.func @_mlp_policy_kernel(%arg0: i32, %arg1: memref<8x16xf32, #tpu.memory_space<vmem>>, %arg2: memref<16x128xf32, #tpu.memory_space<vmem>>, %arg3: memref<1x128xf32, #tpu.memory_space<vmem>>, %arg4: memref<128x128xf32, #tpu.memory_space<vmem>>, %arg5: memref<1x128xf32, #tpu.memory_space<vmem>>, %arg6: memref<128x8xf32, #tpu.memory_space<vmem>>, %arg7: memref<1x8xf32, #tpu.memory_space<vmem>>, %arg8: memref<8x8xf32, #tpu.memory_space<vmem>>) attributes {dimension_semantics = [#tpu.dimension_semantics<parallel>], iteration_bounds = array<i64: 1>, scalar_prefetch = 0 : i64, scratch_operands = 0 : i64, tpu.core_type = #tpu.core_type<tc>, window_params = [{transform_indices = @transform_0, window_bounds = array<i64: 8, 16>}, {pipeline_mode = #tpu.pipeline_mode<synchronous>, transform_indices = @transform_1, window_bounds = array<i64: 16, 128>}, {pipeline_mode = #tpu.pipeline_mode<synchronous>, transform_indices = @transform_2, window_bounds = array<i64: 1, 128>}, {pipeline_mode = #tpu.pipeline_mode<synchronous>, transform_indices = @transform_3, window_bounds = array<i64: 128, 128>}, {pipeline_mode = #tpu.pipeline_mode<synchronous>, transform_indices = @transform_4, window_bounds = array<i64: 1, 128>}, {pipeline_mode = #tpu.pipeline_mode<synchronous>, transform_indices = @transform_5, window_bounds = array<i64: 128, 8>}, {pipeline_mode = #tpu.pipeline_mode<synchronous>, transform_indices = @transform_6, window_bounds = array<i64: 1, 8>}, {transform_indices = @transform_7, window_bounds = array<i64: 8, 8>}]} {
    %c0 = arith.constant 0 : index
    %c0_0 = arith.constant 0 : index
    %0 = vector.load %arg1[%c0, %c0_0] : memref<8x16xf32, #tpu.memory_space<vmem>>, vector<8x16xf32>
    %c0_1 = arith.constant 0 : index
    %c0_2 = arith.constant 0 : index
    %1 = vector.load %arg2[%c0_1, %c0_2] : memref<16x128xf32, #tpu.memory_space<vmem>>, vector<16x128xf32>
    %c0_3 = arith.constant 0 : index
    %c0_4 = arith.constant 0 : index
    %2 = vector.load %arg3[%c0_3, %c0_4] : memref<1x128xf32, #tpu.memory_space<vmem>>, vector<1x128xf32>
    %cst = arith.constant dense<0.000000e+00> : vector<8x128xf32>
    %3 = tpu.matmul %0, %1, %cst {dimension_numbers = #tpu.dot_dimension_numbers<[1], [0], [0], [1], [0, 0, 1, 1], [], []>} : vector<8x16xf32>, vector<16x128xf32>, vector<8x128xf32> -> vector<8x128xf32>
    %4 = vector.broadcast %2 : vector<1x128xf32> to vector<8x128xf32>
    %5 = arith.addf %3, %4 : vector<8x128xf32>
    %6 = math.tanh %5 : vector<8x128xf32>
    %c0_5 = arith.constant 0 : index
    %c0_6 = arith.constant 0 : index
    %7 = vector.load %arg4[%c0_5, %c0_6] : memref<128x128xf32, #tpu.memory_space<vmem>>, vector<128x128xf32>
    %c0_7 = arith.constant 0 : index
    %c0_8 = arith.constant 0 : index
    %8 = vector.load %arg5[%c0_7, %c0_8] : memref<1x128xf32, #tpu.memory_space<vmem>>, vector<1x128xf32>
    %cst_9 = arith.constant dense<0.000000e+00> : vector<8x128xf32>
    %9 = tpu.matmul %6, %7, %cst_9 {dimension_numbers = #tpu.dot_dimension_numbers<[1], [0], [0], [1], [0, 0, 1, 1], [], []>} : vector<8x128xf32>, vector<128x128xf32>, vector<8x128xf32> -> vector<8x128xf32>
    %10 = vector.broadcast %8 : vector<1x128xf32> to vector<8x128xf32>
    %11 = arith.addf %9, %10 : vector<8x128xf32>
    %12 = math.tanh %11 : vector<8x128xf32>
    %c0_10 = arith.constant 0 : index
    %c0_11 = arith.constant 0 : index
    %13 = vector.load %arg6[%c0_10, %c0_11] : memref<128x8xf32, #tpu.memory_space<vmem>>, vector<128x8xf32>
    %c0_12 = arith.constant 0 : index
    %c0_13 = arith.constant 0 : index
    %14 = vector.load %arg7[%c0_12, %c0_13] : memref<1x8xf32, #tpu.memory_space<vmem>>, vector<1x8xf32>
    %cst_14 = arith.constant dense<0.000000e+00> : vector<8x8xf32>
    %15 = tpu.matmul %12, %13, %cst_14 {dimension_numbers = #tpu.dot_dimension_numbers<[1], [0], [0], [1], [0, 0, 1, 1], [], []>} : vector<8x128xf32>, vector<128x8xf32>, vector<8x8xf32> -> vector<8x8xf32>
    %16 = vector.broadcast %14 : vector<1x8xf32> to vector<8x8xf32>
    %17 = arith.addf %15, %16 : vector<8x8xf32>
    %18 = tpu.iota {dimensions = array<i32: 1>} : vector<8x8xi32>
    %cst_15 = arith.constant -2.000000e+01 : f32
    %cst_16 = arith.constant 2.000000e+00 : f32
    %19 = vector.broadcast %cst_15 : f32 to vector<8x8xf32>
    %20 = arith.maximumf %19, %17 : vector<8x8xf32>
    %21 = vector.broadcast %cst_16 : f32 to vector<8x8xf32>
    %22 = arith.minimumf %21, %20 : vector<8x8xf32>
    %23 = math.exp %22 : vector<8x8xf32>
    %c4_i32 = arith.constant 4 : i32
    %24 = vector.broadcast %c4_i32 : i32 to vector<8x8xi32>
    %25 = arith.cmpi sge, %18, %24 : vector<8x8xi32>
    %26 = arith.select %25, %23, %17 : vector<8x8xi1>, vector<8x8xf32>
    %c0_17 = arith.constant 0 : index
    %c0_18 = arith.constant 0 : index
    %27 = vector.load %arg8[%c0_17, %c0_18] : memref<8x8xf32, #tpu.memory_space<vmem>>, vector<8x8xf32>
    tpu.vector_store %arg8[%c0_17, %c0_18], %26 {strides = array<i32>} : memref<8x8xf32, #tpu.memory_space<vmem>>, vector<8x8xf32>,
    return
  }
  func.func @transform_0(%arg0: i32) -> (i32, i32) {
    %c0_i32 = arith.constant 0 : i32
    %c0_i32_0 = arith.constant 0 : i32
    return %arg0, %c0_i32 : i32, i32
  }
  func.func @transform_1(%arg0: i32) -> (i32, i32) {
    %c0_i32 = arith.constant 0 : i32
    %c0_i32_0 = arith.constant 0 : i32
    %c0_i32_1 = arith.constant 0 : i32
    return %c0_i32, %c0_i32_0 : i32, i32
  }
  func.func @transform_2(%arg0: i32) -> (i32, i32) {
    %c0_i32 = arith.constant 0 : i32
    %c0_i32_0 = arith.constant 0 : i32
    %c0_i32_1 = arith.constant 0 : i32
    return %c0_i32, %c0_i32_0 : i32, i32
  }
  func.func @transform_3(%arg0: i32) -> (i32, i32) {
    %c0_i32 = arith.constant 0 : i32
    %c0_i32_0 = arith.constant 0 : i32
    %c0_i32_1 = arith.constant 0 : i32
    return %c0_i32, %c0_i32_0 : i32, i32
  }
  func.func @transform_4(%arg0: i32) -> (i32, i32) {
    %c0_i32 = arith.constant 0 : i32
    %c0_i32_0 = arith.constant 0 : i32
    %c0_i32_1 = arith.constant 0 : i32
    return %c0_i32, %c0_i32_0 : i32, i32
  }
  func.func @transform_5(%arg0: i32) -> (i32, i32) {
    %c0_i32 = arith.constant 0 : i32
    %c0_i32_0 = arith.constant 0 : i32
    %c0_i32_1 = arith.constant 0 : i32
    return %c0_i32, %c0_i32_0 : i32, i32
  }
  func.func @transform_6(%arg0: i32) -> (i32, i32) {
    %c0_i32 = arith.constant 0 : i32
    %c0_i32_0 = arith.constant 0 : i32
    %c0_i32_1 = arith.constant 0 : i32
    return %c0_i32, %c0_i32_0 : i32, i32
  }
  func.func @transform_7(%arg0: i32) -> (i32, i32) {
    %c0_i32 = arith.constant 0 : i32
    %c0_i32_0 = arith.constant 0 : i32
    return %arg0, %c0_i32 : i32, i32
  }
}

module attributes {stable_mosaic.version = 11 : i64} {
  func.func @_mlp_policy_kernel(%arg0: i32, %arg1: memref<8x16xf32, #tpu.memory_space<vmem>>, %arg2: memref<16x128xf32, #tpu.memory_space<vmem>>, %arg3: memref<1x128xf32, #tpu.memory_space<vmem>>, %arg4: memref<128x128xf32, #tpu.memory_space<vmem>>, %arg5: memref<1x128xf32, #tpu.memory_space<vmem>>, %arg6: memref<128x8xf32, #tpu.memory_space<vmem>>, %arg7: memref<1x8xf32, #tpu.memory_space<vmem>>, %arg8: memref<8x8xf32, #tpu.memory_space<vmem>>) attributes {dimension_semantics = [#tpu.dimension_semantics<parallel>], iteration_bounds = array<i64: 1>, scalar_prefetch = 0 : i64, scratch_operands = 0 : i64, tpu.core_type = #tpu.core_type<tc>, window_params = [{transform_indices = @transform_0, window_bounds = array<i64: 8, 16>}, {pipeline_mode = #tpu.pipeline_mode<synchronous>, transform_indices = @transform_1, window_bounds = array<i64: 16, 128>}, {pipeline_mode = #tpu.pipeline_mode<synchronous>, transform_indices = @transform_2, window_bounds = array<i64: 1, 128>}, {pipeline_mode = #tpu.pipeline_mode<synchronous>, transform_indices = @transform_3, window_bounds = array<i64: 128, 128>}, {pipeline_mode = #tpu.pipeline_mode<synchronous>, transform_indices = @transform_4, window_bounds = array<i64: 1, 128>}, {pipeline_mode = #tpu.pipeline_mode<synchronous>, transform_indices = @transform_5, window_bounds = array<i64: 128, 8>}, {pipeline_mode = #tpu.pipeline_mode<synchronous>, transform_indices = @transform_6, window_bounds = array<i64: 1, 8>}, {transform_indices = @transform_7, window_bounds = array<i64: 8, 8>}]} {
    %c0 = arith.constant 0 : index
    %c0_0 = arith.constant 0 : index
    %0 = vector.load %arg1[%c0, %c0_0] : memref<8x16xf32, #tpu.memory_space<vmem>>, vector<8x16xf32>
    %c0_1 = arith.constant 0 : index
    %c0_2 = arith.constant 0 : index
    %1 = vector.load %arg2[%c0_1, %c0_2] : memref<16x128xf32, #tpu.memory_space<vmem>>, vector<16x128xf32>
    %c0_3 = arith.constant 0 : index
    %c0_4 = arith.constant 0 : index
    %2 = vector.load %arg3[%c0_3, %c0_4] : memref<1x128xf32, #tpu.memory_space<vmem>>, vector<1x128xf32>
    %cst = arith.constant dense<0.000000e+00> : vector<8x128xf32>
    %3 = tpu.matmul %0, %1, %cst {dimension_numbers = #tpu.dot_dimension_numbers<[1], [0], [0], [1], [0, 0, 1, 1], [], []>} : vector<8x16xf32>, vector<16x128xf32>, vector<8x128xf32> -> vector<8x128xf32>
    %4 = vector.broadcast %2 : vector<1x128xf32> to vector<8x128xf32>
    %5 = arith.addf %3, %4 : vector<8x128xf32>
    %6 = math.tanh %5 : vector<8x128xf32>
    %c0_5 = arith.constant 0 : index
    %c0_6 = arith.constant 0 : index
    %7 = vector.load %arg4[%c0_5, %c0_6] : memref<128x128xf32, #tpu.memory_space<vmem>>, vector<128x128xf32>
    %c0_7 = arith.constant 0 : index
    %c0_8 = arith.constant 0 : index
    %8 = vector.load %arg5[%c0_7, %c0_8] : memref<1x128xf32, #tpu.memory_space<vmem>>, vector<1x128xf32>
    %cst_9 = arith.constant dense<0.000000e+00> : vector<8x128xf32>
    %9 = tpu.matmul %6, %7, %cst_9 {dimension_numbers = #tpu.dot_dimension_numbers<[1], [0], [0], [1], [0, 0, 1, 1], [], []>} : vector<8x128xf32>, vector<128x128xf32>, vector<8x128xf32> -> vector<8x128xf32>
    %10 = vector.broadcast %8 : vector<1x128xf32> to vector<8x128xf32>
    %11 = arith.addf %9, %10 : vector<8x128xf32>
    %12 = math.tanh %11 : vector<8x128xf32>
    %c0_10 = arith.constant 0 : index
    %c0_11 = arith.constant 0 : index
    %13 = vector.load %arg6[%c0_10, %c0_11] : memref<128x8xf32, #tpu.memory_space<vmem>>, vector<128x8xf32>
    %c0_12 = arith.constant 0 : index
    %c0_13 = arith.constant 0 : index
    %14 = vector.load %arg7[%c0_12, %c0_13] : memref<1x8xf32, #tpu.memory_space<vmem>>, vector<1x8xf32>
    %cst_14 = arith.constant dense<0.000000e+00> : vector<8x8xf32>
    %15 = tpu.matmul %12, %13, %cst_14 {dimension_numbers = #tpu.dot_dimension_numbers<[1], [0], [0], [1], [0, 0, 1, 1], [], []>} : vector<8x128xf32>, vector<128x8xf32>, vector<8x8xf32> -> vector<8x8xf32>
    %16 = vector.broadcast %14 : vector<1x8xf32> to vector<8x8xf32>
    %17 = arith.addf %15, %16 : vector<8x8xf32>
    %18 = tpu.iota {dimensions = array<i32: 1>} : vector<8x8xi32>
    %cst_15 = arith.constant -2.000000e+01 : f32
    %cst_16 = arith.constant 2.000000e+00 : f32
    %19 = vector.broadcast %cst_15 : f32 to vector<8x8xf32>
    %20 = arith.maximumf %19, %17 : vector<8x8xf32>
    %21 = vector.broadcast %cst_16 : f32 to vector<8x8xf32>
    %22 = arith.minimumf %21, %20 : vector<8x8xf32>
    %23 = math.exp %22 : vector<8x8xf32>
    %c4_i32 = arith.constant 4 : i32
    %24 = vector.broadcast %c4_i32 : i32 to vector<8x8xi32>
    %25 = arith.cmpi sge, %18, %24 : vector<8x8xi32>
    %26 = arith.select %25, %23, %17 : vector<8x8xi1>, vector<8x8xf32>
    %c0_17 = arith.constant 0 : index
    %c0_18 = arith.constant 0 : index
    %27 = vector.load %arg8[%c0_17, %c0_18] : memref<8x8xf32, #tpu.memory_space<vmem>>, vector<8x8xf32>
    tpu.vector_store %arg8[%c0_17, %c0_18], %26 {strides = array<i32>} : memref<8x8xf32, #tpu.memory_space<vmem>>, vector<8x8xf32>,
    return
  }
  func.func @transform_0(%arg0: i32) -> (i32, i32) {
    %c0_i32 = arith.constant 0 : i32
    %c0_i32_0 = arith.constant 0 : i32
    return %arg0, %c0_i32 : i32, i32
  }
  func.func @transform_1(%arg0: i32) -> (i32, i32) {
    %c0_i32 = arith.constant 0 : i32
    %c0_i32_0 = arith.constant 0 : i32
    %c0_i32_1 = arith.constant 0 : i32
    return %c0_i32, %c0_i32_0 : i32, i32
  }
  func.func @transform_2(%arg0: i32) -> (i32, i32) {
    %c0_i32 = arith.constant 0 : i32
    %c0_i32_0 = arith.constant 0 : i32
    %c0_i32_1 = arith.constant 0 : i32
    return %c0_i32, %c0_i32_0 : i32, i32
  }
  func.func @transform_3(%arg0: i32) -> (i32, i32) {
    %c0_i32 = arith.constant 0 : i32
    %c0_i32_0 = arith.constant 0 : i32
    %c0_i32_1 = arith.constant 0 : i32
    return %c0_i32, %c0_i32_0 : i32, i32
  }
  func.func @transform_4(%arg0: i32) -> (i32, i32) {
    %c0_i32 = arith.constant 0 : i32
    %c0_i32_0 = arith.constant 0 : i32
    %c0_i32_1 = arith.constant 0 : i32
    return %c0_i32, %c0_i32_0 : i32, i32
  }
  func.func @transform_5(%arg0: i32) -> (i32, i32) {
    %c0_i32 = arith.constant 0 : i32
    %c0_i32_0 = arith.constant 0 : i32
    %c0_i32_1 = arith.constant 0 : i32
    return %c0_i32, %c0_i32_0 : i32, i32
  }
  func.func @transform_6(%arg0: i32) -> (i32, i32) {
    %c0_i32 = arith.constant 0 : i32
    %c0_i32_0 = arith.constant 0 : i32
    %c0_i32_1 = arith.constant 0 : i32
    return %c0_i32, %c0_i32_0 : i32, i32
  }
  func.func @transform_7(%arg0: i32) -> (i32, i32) {
    %c0_i32 = arith.constant 0 : i32
    %c0_i32_0 = arith.constant 0 : i32
    return %arg0, %c0_i32 : i32, i32
  }
}

</mosaic_0001>

<bundles_post_ra>
// kernel: tpu_custom_call.1
= control target key start
LH: loop header
LB: loop body
LE: loop exit
PB: predicated region body
PF: predicated region fallthrough
CT: control target
= control target key end

     0   :  { %12 = vsyncpa [#allocation3], 0  ;;  %s764_s0 = inlined_call_operand.hbm [shape: f32[8,16], index: 0, kind: input, shape index: {}]   ;;  %s765_s1 = inlined_call_operand.vmem [shape: f32[16,128], index: 1, kind: input, shape index: {}]   ;;  %s766_s2 = inlined_call_operand.vmem [shape: f32[1,128], index: 2, kind: input, shape index: {}]   ;;  %s767_s3 = inlined_call_operand.vmem [shape: f32[128,128], index: 3, kind: input, shape index: {}]   ;;  %s768_s4 = inlined_call_operand.vmem [shape: f32[1,128], index: 4, kind: input, shape index: {}]   ;;  %s769_s5 = inlined_call_operand.vmem [shape: f32[128,8], index: 5, kind: input, shape index: {}]   ;;  %s770_s6 = inlined_call_operand.vmem [shape: f32[1,8], index: 6, kind: input, shape index: {}]   ;;  %s771_s7 = inlined_call_operand.hbm [shape: f32[8,8], index: 7, kind: output, shape index: {}]  }
   0x1   :  { %13 = vsyncpa [#allocation4], 0  ;;  %s564_s24 = smov [#allocation2]   ;;  %s516_s28 = scalar_lea.hbm %s764_s0, 128 }
   0x2   :  { %s20_s25 = sshll.u32 %s564_s24, 4  ;;  %p517_p0 = scmp.ne.s32.totalorder %s764_s0, %s516_s28  ;;  %s21_s25 = int_to_ptr.vmem [resolvable:$true] %s20_s25 }
   0x3   :  { %p520_p1 = scmp.lt.u32.totalorder %s516_s28, %s764_s0 }
   0x5   :  { %p522_p2 = pnand %p520_p1, %p517_p0 }
   0x7   :  { %525 = shalt.err (!%p522_p2)
}
   0x8   :  { %s526_s10 = scalar_lea.vmem %s21_s25, 128  ;;  %p531_p4 = scmp.lt.s32.totalorder %s21_s25, %s21_s25 }
   0x9   :  { %p527_p3 = scmp.ne.s32.totalorder %s21_s25, %s526_s10  ;;  %p532_p5 = scmp.lt.s32.totalorder %s526_s10, %s526_s10 }
   0xb   :  { %p533_p6 = por %p532_p5, %p531_p4 }
   0xd   :  { %p534_p7 = pnand %p533_p6, %p527_p3 }
   0xf   :  { %537 = shalt.err (!%p534_p7)
}
  0x10   :  { %23 = dma.hbm_to_vmem [thread:$0]  %s764_s0, 128, %s21_s25, [#allocation3]  }
  0x11   :  { %560 = dma.done.wait [#allocation3], 128  }
  0x12   :  { %561 = vsyncadd [#allocation3], 4294967168  ;;  %v565_v0 = vmov 0.0|0.0   ;;  %vm566_vm0 = vmmov 0   ;;  %v567_v1 = vmov 0.0   ;;  %v40_v2 = vld [vmem:[%s765_s1] sm:$0xff] }
  0x13   :  { %454 = vmatprep.subr.bf16.mxu0 %v565_v0  ;;  %381 = vmatprep.mubr.msk.f32.mxu0 %vm566_vm0, %v567_v1  ;;  %v41_v3 = vld [vmem:[%s765_s1 + $0x8] sm:$0xff]  ;;  %v124_v5 = vld [vmem:[%s767_s3] sm:$0xff]  ;;  %v126_v7 = vld [vmem:[%s767_s3 + $0x10] sm:$0xff]  ;;  %vm49_vm1 = vcmask 130048   ;;  %vm319_vm3 = vcmask 64512  }
  0x14   :  { %457 = vmatprep.subr.bf16.mxu1 %v565_v0  ;;  %416 = vmatprep.mubr.msk.f32.mxu1 %vm566_vm0, %v567_v1  ;;  %v455_v4 = vpack.c.bf16 %v41_v3, %v40_v2  ;;  %v125_v6 = vld [vmem:[%s767_s3 + $0x8] sm:$0xff]  ;;  %v127_v9 = vld [vmem:[%s767_s3 + $0x18] sm:$0xff]  ;;  %v39_v10 = vld [vmem:[#allocation2] sm:$0xff] }
  0x15   :  { %v458_v8 = vpack.c.bf16 %v125_v6, %v124_v5  ;;  %v461_v11 = vpack.c.bf16 %v127_v9, %v126_v7  ;;  %v128_v12 = vld [vmem:[%s767_s3 + $0x20] sm:$0xff]  ;;  %v129_v13 = vld [vmem:[%s767_s3 + $0x28] sm:$0xff]  ;;  %v130_v15 = vld [vmem:[%s767_s3 + $0x30] sm:$0xff]  ;;  %v311_v7 = vlaneseq }
  0x16   :  { %456 = vmatpush3.bf16.msra.mxu0 %v455_v4  ;;  %v464_v14 = vpack.c.bf16 %v129_v13, %v128_v12  ;;  %v131_v16 = vld [vmem:[%s767_s3 + $0x38] sm:$0xff]  ;;  %v132_v18 = vld [vmem:[%s767_s3 + $0x40] sm:$0xff]  ;;  %v133_v19 = vld [vmem:[%s767_s3 + $0x48] sm:$0xff] }
  0x17   :  { %459 = vmatpush3.bf16.msra.mxu1 %v458_v8  ;;  %481 = vmatprep.subr.bf16.mxu0 %v565_v0  ;;  %v467_v17 = vpack.c.bf16 %v131_v16, %v130_v15  ;;  %v470_v20 = vpack.c.bf16 %v133_v19, %v132_v18  ;;  %v134_v21 = vld [vmem:[%s767_s3 + $0x50] sm:$0xff]  ;;  %v135_v22 = vld [vmem:[%s767_s3 + $0x58] sm:$0xff]  ;;  %v136_v24 = vld [vmem:[%s767_s3 + $0x60] sm:$0xff]  ;;  %v312_v8 = vand.u32 127, %v311_v7 }
  0x18   :  { %460 = vmatprep.subr.bf16.mxu1 %v565_v0  ;;  %v473_v23 = vpack.c.bf16 %v135_v22, %v134_v21  ;;  %v137_v25 = vld [vmem:[%s767_s3 + $0x68] sm:$0xff]  ;;  %v138_v27 = vld [vmem:[%s767_s3 + $0x70] sm:$0xff]  ;;  %v139_v28 = vld [vmem:[%s767_s3 + $0x78] sm:$0xff] }
  0x19   :  { %382 = vmatmul.mubr.msk.f32.vlgmr.msra.gmra.mrb[0].mxu0 %vm49_vm1, %v39_v10  ;;  %v476_v26 = vpack.c.bf16 %v137_v25, %v136_v24  ;;  %v479_v29 = vpack.c.bf16 %v139_v28, %v138_v27  ;;  %v218_v30 = vld [vmem:[%s769_s5] sm:$0xff]  ;;  %v219_v31 = vld [vmem:[%s769_s5 + $0x8] sm:$0xff]  ;;  %v220_v32 = vld [vmem:[%s769_s5 + $0x10] sm:$0xff]  ;;  %vm317_vm2 = vcmp.ge.s32.totalorder %v312_v8, 4 }
  0x1a   :  { %451 = vmatprep.mubr.msk.f32.mxu0 %vm566_vm0, %v567_v1  ;;  %v482_v33 = vpack.c.bf16 %v219_v31, %v218_v30  ;;  %v221_v34 = vld [vmem:[%s769_s5 + $0x18] sm:$0xff]  ;;  %v222_v36 = vld [vmem:[%s769_s5 + $0x20] sm:$0xff]  ;;  %v223_v37 = vld [vmem:[%s769_s5 + $0x28] sm:$0xff] }
  0x1b   :  { %462 = vmatpush3.bf16.msra.mxu1 %v461_v11  ;;  %v485_v35 = vpack.c.bf16 %v221_v34, %v220_v32  ;;  %v488_v38 = vpack.c.bf16 %v223_v37, %v222_v36  ;;  %v224_v39 = vld [vmem:[%s769_s5 + $0x30] sm:$0xff]  ;;  %v225_v40 = vld [vmem:[%s769_s5 + $0x38] sm:$0xff]  ;;  %v226_v42 = vld [vmem:[%s769_s5 + $0x40] sm:$0xff] }
  0x1c   :  { %463 = vmatprep.subr.bf16.mxu1 %v565_v0  ;;  %483 = vmatpush3.bf16.msra.mxu0 %v482_v33  ;;  %v491_v41 = vpack.c.bf16 %v225_v40, %v224_v39  ;;  %v227_v43 = vld [vmem:[%s769_s5 + $0x48] sm:$0xff]  ;;  %v336_v45 = vld [vmem:[%s766_s2] ss:$0 sm:$0xff]  ;;  %v228_v50 = vld [vmem:[%s769_s5 + $0x50] sm:$0xff] }
  0x1d   :  { %484 = vmatprep.subr.bf16.mxu0 %v565_v0  ;;  %v494_v44 = vpack.c.bf16 %v227_v43, %v226_v42  ;;  %v229_v51 = vld [vmem:[%s769_s5 + $0x58] sm:$0xff]  ;;  %v230_v53 = vld [vmem:[%s769_s5 + $0x60] sm:$0xff]  ;;  %v231_v54 = vld [vmem:[%s769_s5 + $0x68] sm:$0xff] }
  0x1e   :  { %v497_v52 = vpack.c.bf16 %v229_v51, %v228_v50  ;;  %v500_v55 = vpack.c.bf16 %v231_v54, %v230_v53  ;;  %v232_v56 = vld [vmem:[%s769_s5 + $0x70] sm:$0xff]  ;;  %v233_v57 = vld [vmem:[%s769_s5 + $0x78] sm:$0xff]  ;;  %v338_v59 = vld [vmem:[%s768_s4] ss:$0 sm:$0xff]  ;;  %s568_s4 = smov [#allocation5]  }
  0x1f   :  { %465 = vmatpush3.bf16.msra.mxu1 %v464_v14  ;;  %v503_v58 = vpack.c.bf16 %v233_v57, %v232_v56  ;;  %v339_v1 = vld [vmem:[%s770_s6] ss:$0 sm:$0xff]  ;;  %s327_s5 = sshll.u32 %s568_s4, 4  ;;  %s328_s5 = int_to_ptr.vmem [resolvable:$true] %s327_s5 }
  0x20   :  { %466 = vmatprep.subr.bf16.mxu1 %v565_v0  ;;  %486 = vmatpush3.bf16.msra.mxu0 %v485_v35  ;;  %s538_s9 = scalar_lea.vmem %s328_s5, 128  ;;  %p543_p9 = scmp.lt.s32.totalorder %s328_s5, %s328_s5 }
  0x21   :  { %487 = vmatprep.subr.bf16.mxu0 %v565_v0  ;;  %p539_p8 = scmp.ne.s32.totalorder %s328_s5, %s538_s9  ;;  %p544_p10 = scmp.lt.s32.totalorder %s538_s9, %s538_s9 }
  0x23   :  { %468 = vmatpush3.bf16.msra.mxu1 %v467_v17  ;;  %p545_p11 = por %p544_p10, %p543_p9 }
  0x24   :  { %469 = vmatprep.subr.bf16.mxu1 %v565_v0  ;;  %489 = vmatpush3.bf16.msra.mxu0 %v488_v38 }
  0x25   :  { %490 = vmatprep.subr.bf16.mxu0 %v565_v0  ;;  %p546_p12 = pnand %p545_p11, %p539_p8 }
  0x27   :  { %471 = vmatpush3.bf16.msra.mxu1 %v470_v20 }
  0x28   :  { %472 = vmatprep.subr.bf16.mxu1 %v565_v0  ;;  %492 = vmatpush3.bf16.msra.mxu0 %v491_v41 }
  0x29   :  { %493 = vmatprep.subr.bf16.mxu0 %v565_v0 }
  0x2b   :  { %474 = vmatpush3.bf16.msra.mxu1 %v473_v23 }
  0x2c   :  { %475 = vmatprep.subr.bf16.mxu1 %v565_v0  ;;  %495 = vmatpush3.bf16.msra.mxu0 %v494_v44 }
  0x2d   :  { %496 = vmatprep.subr.bf16.mxu0 %v565_v0 }
  0x2f   :  { %477 = vmatpush3.bf16.msra.mxu1 %v476_v26 }
  0x30   :  { %478 = vmatprep.subr.bf16.mxu1 %v565_v0  ;;  %498 = vmatpush3.bf16.msra.mxu0 %v497_v52 }
  0x31   :  { %499 = vmatprep.subr.bf16.mxu0 %v565_v0 }
  0x33   :  { %480 = vmatpush3.bf16.msra.mxu1 %v479_v29 }
  0x34   :  { %501 = vmatpush3.bf16.msra.mxu0 %v500_v55 }
  0x35   :  { %502 = vmatprep.subr.bf16.mxu0 %v565_v0 }
  0x38   :  { %504 = vmatpush3.bf16.msra.mxu0 %v503_v58 }
  0xec   :  { %v119_v46 = vpop.f32.mrb[0].mxu0 }
  0xed   :  { %v120_v47 = vadd.f32 %v336_v45, %v119_v46  ;;  %v383_v48 = vpop.f32.mrb[1].mxu0 }
  0xef   :  { %510 = vtanh.f32 %v120_v47 }
  0xf9   :  { %v511_v49 = vpop.eup %510 }
  0xfa   :  { %417 = vmatmul.mubr.f32.vlgmr.msra.gmra.mrb[0].mxu1 %v511_v49 }
 0x1cd   :  { %v213_v60 = vpop.f32.mrb[0].mxu1 }
 0x1ce   :  { %v214_v61 = vadd.f32 %v338_v59, %v213_v60  ;;  %v418_v62 = vpop.f32.mrb[1].mxu1 }
 0x1d0   :  { %512 = vtanh.f32 %v214_v61 }
 0x1da   :  { %v513_v63 = vpop.eup %512 }
 0x1db   :  { %452 = vmatmul.mubr.f32.vlgmr.msra.gmra.mrb[2].mxu0 %v513_v63 }
 0x2ae   :  { %v307_v2 = vpop.f32.mrb[2].mxu0 }
 0x2af   :  { %v308_v3 = vadd.f32 %v339_v1, %v307_v2  ;;  %v453_v4 = vpop.f32.mrb[3].mxu0 }
 0x2b1   :  { %v313_v5 = vmax.f32 %v308_v3, -20.0 }
 0x2b3   :  { %v314_v0 = vmin.f32 %v313_v5, 2.0 }
 0x2b5   :  { %v315_v6 = vmul.f32 1.442695, %v314_v0 }
 0x2b7   :  { %514 = vpow2.f32 %v315_v6 }
 0x2c1   :  { %v515_v9 = vpop.eup %514 }
 0x2c2   :  { %v318_v10 = vsel %vm317_vm2, %v515_v9, %v308_v3 }
 0x2c3   :  { %320 = vst.msk [vmem:[#allocation5] sm:$0xff] %vm319_vm3, %v318_v10 }
 0x2c4   :  { %549 = shalt.err (!%p546_p12)
}
 0x2c5   :  { %s550_s11 = scalar_lea.hbm %s771_s7, 128 }
 0x2c6   :  { %p551_p13 = scmp.ne.s32.totalorder %s771_s7, %s550_s11  ;;  %p554_p0 = scmp.lt.u32.totalorder %s550_s11, %s771_s7 }
 0x2c8   :  { %p556_p1 = pnand %p554_p0, %p551_p13 }
 0x2ca   :  { %559 = shalt.err (!%p556_p1)
}
 0x2cb   :  { %330 = dma.vmem_to_hbm [thread:$0]  %s328_s5, 128, %s771_s7, [#allocation4]  }
 0x2cc   :  { %562 = dma.done.wait [#allocation4], 128  }
 0x2cd   :  { %563 = vsyncadd [#allocation4], 4294967168 }
 0x2ce   :  { %334 = vsyncpa [#allocation3], 1 }
 0x2cf   :  { %335 = vsyncpa [#allocation4], 1 }

// kernel: tpu_custom_call.1
= control target key start
LH: loop header
LB: loop body
LE: loop exit
PB: predicated region body
PF: predicated region fallthrough
CT: control target
= control target key end

     0   :  { %12 = vsyncpa [#allocation3], 0  ;;  %s764_s0 = inlined_call_operand.hbm [shape: f32[8,16], index: 0, kind: input, shape index: {}]   ;;  %s765_s1 = inlined_call_operand.vmem [shape: f32[16,128], index: 1, kind: input, shape index: {}]   ;;  %s766_s2 = inlined_call_operand.vmem [shape: f32[1,128], index: 2, kind: input, shape index: {}]   ;;  %s767_s3 = inlined_call_operand.vmem [shape: f32[128,128], index: 3, kind: input, shape index: {}]   ;;  %s768_s4 = inlined_call_operand.vmem [shape: f32[1,128], index: 4, kind: input, shape index: {}]   ;;  %s769_s5 = inlined_call_operand.vmem [shape: f32[128,8], index: 5, kind: input, shape index: {}]   ;;  %s770_s6 = inlined_call_operand.vmem [shape: f32[1,8], index: 6, kind: input, shape index: {}]   ;;  %s771_s7 = inlined_call_operand.hbm [shape: f32[8,8], index: 7, kind: output, shape index: {}]  }
   0x1   :  { %13 = vsyncpa [#allocation4], 0  ;;  %s564_s24 = smov [#allocation2]   ;;  %s516_s28 = scalar_lea.hbm %s764_s0, 128 }
   0x2   :  { %s20_s25 = sshll.u32 %s564_s24, 4  ;;  %p517_p0 = scmp.ne.s32.totalorder %s764_s0, %s516_s28  ;;  %s21_s25 = int_to_ptr.vmem [resolvable:$true] %s20_s25 }
   0x3   :  { %p520_p1 = scmp.lt.u32.totalorder %s516_s28, %s764_s0 }
   0x5   :  { %p522_p2 = pnand %p520_p1, %p517_p0 }
   0x7   :  { %525 = shalt.err (!%p522_p2)
}
   0x8   :  { %s526_s10 = scalar_lea.vmem %s21_s25, 128  ;;  %p531_p4 = scmp.lt.s32.totalorder %s21_s25, %s21_s25 }
   0x9   :  { %p527_p3 = scmp.ne.s32.totalorder %s21_s25, %s526_s10  ;;  %p532_p5 = scmp.lt.s32.totalorder %s526_s10, %s526_s10 }
   0xb   :  { %p533_p6 = por %p532_p5, %p531_p4 }
   0xd   :  { %p534_p7 = pnand %p533_p6, %p527_p3 }
   0xf   :  { %537 = shalt.err (!%p534_p7)
}
  0x10   :  { %23 = dma.hbm_to_vmem [thread:$0]  %s764_s0, 128, %s21_s25, [#allocation3]  }
  0x11   :  { %560 = dma.done.wait [#allocation3], 128  }
  0x12   :  { %561 = vsyncadd [#allocation3], 4294967168  ;;  %v565_v0 = vmov 0.0|0.0   ;;  %vm566_vm0 = vmmov 0   ;;  %v567_v1 = vmov 0.0   ;;  %v40_v2 = vld [vmem:[%s765_s1] sm:$0xff] }
  0x13   :  { %454 = vmatprep.subr.bf16.mxu0 %v565_v0  ;;  %381 = vmatprep.mubr.msk.f32.mxu0 %vm566_vm0, %v567_v1  ;;  %v41_v3 = vld [vmem:[%s765_s1 + $0x8] sm:$0xff]  ;;  %v124_v5 = vld [vmem:[%s767_s3] sm:$0xff]  ;;  %v126_v7 = vld [vmem:[%s767_s3 + $0x10] sm:$0xff]  ;;  %vm49_vm1 = vcmask 130048   ;;  %vm319_vm3 = vcmask 64512  }
  0x14   :  { %457 = vmatprep.subr.bf16.mxu1 %v565_v0  ;;  %416 = vmatprep.mubr.msk.f32.mxu1 %vm566_vm0, %v567_v1  ;;  %v455_v4 = vpack.c.bf16 %v41_v3, %v40_v2  ;;  %v125_v6 = vld [vmem:[%s767_s3 + $0x8] sm:$0xff]  ;;  %v127_v9 = vld [vmem:[%s767_s3 + $0x18] sm:$0xff]  ;;  %v39_v10 = vld [vmem:[#allocation2] sm:$0xff] }
  0x15   :  { %v458_v8 = vpack.c.bf16 %v125_v6, %v124_v5  ;;  %v461_v11 = vpack.c.bf16 %v127_v9, %v126_v7  ;;  %v128_v12 = vld [vmem:[%s767_s3 + $0x20] sm:$0xff]  ;;  %v129_v13 = vld [vmem:[%s767_s3 + $0x28] sm:$0xff]  ;;  %v130_v15 = vld [vmem:[%s767_s3 + $0x30] sm:$0xff]  ;;  %v311_v7 = vlaneseq }
  0x16   :  { %456 = vmatpush3.bf16.msra.mxu0 %v455_v4  ;;  %v464_v14 = vpack.c.bf16 %v129_v13, %v128_v12  ;;  %v131_v16 = vld [vmem:[%s767_s3 + $0x38] sm:$0xff]  ;;  %v132_v18 = vld [vmem:[%s767_s3 + $0x40] sm:$0xff]  ;;  %v133_v19 = vld [vmem:[%s767_s3 + $0x48] sm:$0xff] }
  0x17   :  { %459 = vmatpush3.bf16.msra.mxu1 %v458_v8  ;;  %481 = vmatprep.subr.bf16.mxu0 %v565_v0  ;;  %v467_v17 = vpack.c.bf16 %v131_v16, %v130_v15  ;;  %v470_v20 = vpack.c.bf16 %v133_v19, %v132_v18  ;;  %v134_v21 = vld [vmem:[%s767_s3 + $0x50] sm:$0xff]  ;;  %v135_v22 = vld [vmem:[%s767_s3 + $0x58] sm:$0xff]  ;;  %v136_v24 = vld [vmem:[%s767_s3 + $0x60] sm:$0xff]  ;;  %v312_v8 = vand.u32 127, %v311_v7 }
  0x18   :  { %460 = vmatprep.subr.bf16.mxu1 %v565_v0  ;;  %v473_v23 = vpack.c.bf16 %v135_v22, %v134_v21  ;;  %v137_v25 = vld [vmem:[%s767_s3 + $0x68] sm:$0xff]  ;;  %v138_v27 = vld [vmem:[%s767_s3 + $0x70] sm:$0xff]  ;;  %v139_v28 = vld [vmem:[%s767_s3 + $0x78] sm:$0xff] }
  0x19   :  { %382 = vmatmul.mubr.msk.f32.vlgmr.msra.gmra.mrb[0].mxu0 %vm49_vm1, %v39_v10  ;;  %v476_v26 = vpack.c.bf16 %v137_v25, %v136_v24  ;;  %v479_v29 = vpack.c.bf16 %v139_v28, %v138_v27  ;;  %v218_v30 = vld [vmem:[%s769_s5] sm:$0xff]  ;;  %v219_v31 = vld [vmem:[%s769_s5 + $0x8] sm:$0xff]  ;;  %v220_v32 = vld [vmem:[%s769_s5 + $0x10] sm:$0xff]  ;;  %vm317_vm2 = vcmp.ge.s32.totalorder %v312_v8, 4 }
  0x1a   :  { %451 = vmatprep.mubr.msk.f32.mxu0 %vm566_vm0, %v567_v1  ;;  %v482_v33 = vpack.c.bf16 %v219_v31, %v218_v30  ;;  %v221_v34 = vld [vmem:[%s769_s5 + $0x18] sm:$0xff]  ;;  %v222_v36 = vld [vmem:[%s769_s5 + $0x20] sm:$0xff]  ;;  %v223_v37 = vld [vmem:[%s769_s5 + $0x28] sm:$0xff] }
  0x1b   :  { %462 = vmatpush3.bf16.msra.mxu1 %v461_v11  ;;  %v485_v35 = vpack.c.bf16 %v221_v34, %v220_v32  ;;  %v488_v38 = vpack.c.bf16 %v223_v37, %v222_v36  ;;  %v224_v39 = vld [vmem:[%s769_s5 + $0x30] sm:$0xff]  ;;  %v225_v40 = vld [vmem:[%s769_s5 + $0x38] sm:$0xff]  ;;  %v226_v42 = vld [vmem:[%s769_s5 + $0x40] sm:$0xff] }
  0x1c   :  { %463 = vmatprep.subr.bf16.mxu1 %v565_v0  ;;  %483 = vmatpush3.bf16.msra.mxu0 %v482_v33  ;;  %v491_v41 = vpack.c.bf16 %v225_v40, %v224_v39  ;;  %v227_v43 = vld [vmem:[%s769_s5 + $0x48] sm:$0xff]  ;;  %v336_v45 = vld [vmem:[%s766_s2] ss:$0 sm:$0xff]  ;;  %v228_v50 = vld [vmem:[%s769_s5 + $0x50] sm:$0xff] }
  0x1d   :  { %484 = vmatprep.subr.bf16.mxu0 %v565_v0  ;;  %v494_v44 = vpack.c.bf16 %v227_v43, %v226_v42  ;;  %v229_v51 = vld [vmem:[%s769_s5 + $0x58] sm:$0xff]  ;;  %v230_v53 = vld [vmem:[%s769_s5 + $0x60] sm:$0xff]  ;;  %v231_v54 = vld [vmem:[%s769_s5 + $0x68] sm:$0xff] }
  0x1e   :  { %v497_v52 = vpack.c.bf16 %v229_v51, %v228_v50  ;;  %v500_v55 = vpack.c.bf16 %v231_v54, %v230_v53  ;;  %v232_v56 = vld [vmem:[%s769_s5 + $0x70] sm:$0xff]  ;;  %v233_v57 = vld [vmem:[%s769_s5 + $0x78] sm:$0xff]  ;;  %v338_v59 = vld [vmem:[%s768_s4] ss:$0 sm:$0xff]  ;;  %s568_s4 = smov [#allocation5]  }
  0x1f   :  { %465 = vmatpush3.bf16.msra.mxu1 %v464_v14  ;;  %v503_v58 = vpack.c.bf16 %v233_v57, %v232_v56  ;;  %v339_v1 = vld [vmem:[%s770_s6] ss:$0 sm:$0xff]  ;;  %s327_s5 = sshll.u32 %s568_s4, 4  ;;  %s328_s5 = int_to_ptr.vmem [resolvable:$true] %s327_s5 }
  0x20   :  { %466 = vmatprep.subr.bf16.mxu1 %v565_v0  ;;  %486 = vmatpush3.bf16.msra.mxu0 %v485_v35  ;;  %s538_s9 = scalar_lea.vmem %s328_s5, 128  ;;  %p543_p9 = scmp.lt.s32.totalorder %s328_s5, %s328_s5 }
  0x21   :  { %487 = vmatprep.subr.bf16.mxu0 %v565_v0  ;;  %p539_p8 = scmp.ne.s32.totalorder %s328_s5, %s538_s9  ;;  %p544_p10 = scmp.lt.s32.totalorder %s538_s9, %s538_s9 }
  0x23   :  { %468 = vmatpush3.bf16.msra.mxu1 %v467_v17  ;;  %p545_p11 = por %p544_p10, %p543_p9 }
  0x24   :  { %469 = vmatprep.subr.bf16.mxu1 %v565_v0  ;;  %489 = vmatpush3.bf16.msra.mxu0 %v488_v38 }
  0x25   :  { %490 = vmatprep.subr.bf16.mxu0 %v565_v0  ;;  %p546_p12 = pnand %p545_p11, %p539_p8 }
  0x27   :  { %471 = vmatpush3.bf16.msra.mxu1 %v470_v20 }
  0x28   :  { %472 = vmatprep.subr.bf16.mxu1 %v565_v0  ;;  %492 = vmatpush3.bf16.msra.mxu0 %v491_v41 }
  0x29   :  { %493 = vmatprep.subr.bf16.mxu0 %v565_v0 }
  0x2b   :  { %474 = vmatpush3.bf16.msra.mxu1 %v473_v23 }
  0x2c   :  { %475 = vmatprep.subr.bf16.mxu1 %v565_v0  ;;  %495 = vmatpush3.bf16.msra.mxu0 %v494_v44 }
  0x2d   :  { %496 = vmatprep.subr.bf16.mxu0 %v565_v0 }
  0x2f   :  { %477 = vmatpush3.bf16.msra.mxu1 %v476_v26 }
  0x30   :  { %478 = vmatprep.subr.bf16.mxu1 %v565_v0  ;;  %498 = vmatpush3.bf16.msra.mxu0 %v497_v52 }
  0x31   :  { %499 = vmatprep.subr.bf16.mxu0 %v565_v0 }
  0x33   :  { %480 = vmatpush3.bf16.msra.mxu1 %v479_v29 }
  0x34   :  { %501 = vmatpush3.bf16.msra.mxu0 %v500_v55 }
  0x35   :  { %502 = vmatprep.subr.bf16.mxu0 %v565_v0 }
  0x38   :  { %504 = vmatpush3.bf16.msra.mxu0 %v503_v58 }
  0xec   :  { %v119_v46 = vpop.f32.mrb[0].mxu0 }
  0xed   :  { %v120_v47 = vadd.f32 %v336_v45, %v119_v46  ;;  %v383_v48 = vpop.f32.mrb[1].mxu0 }
  0xef   :  { %510 = vtanh.f32 %v120_v47 }
  0xf9   :  { %v511_v49 = vpop.eup %510 }
  0xfa   :  { %417 = vmatmul.mubr.f32.vlgmr.msra.gmra.mrb[0].mxu1 %v511_v49 }
 0x1cd   :  { %v213_v60 = vpop.f32.mrb[0].mxu1 }
 0x1ce   :  { %v214_v61 = vadd.f32 %v338_v59, %v213_v60  ;;  %v418_v62 = vpop.f32.mrb[1].mxu1 }
 0x1d0   :  { %512 = vtanh.f32 %v214_v61 }
 0x1da   :  { %v513_v63 = vpop.eup %512 }
 0x1db   :  { %452 = vmatmul.mubr.f32.vlgmr.msra.gmra.mrb[2].mxu0 %v513_v63 }
 0x2ae   :  { %v307_v2 = vpop.f32.mrb[2].mxu0 }
 0x2af   :  { %v308_v3 = vadd.f32 %v339_v1, %v307_v2  ;;  %v453_v4 = vpop.f32.mrb[3].mxu0 }
 0x2b1   :  { %v313_v5 = vmax.f32 %v308_v3, -20.0 }
 0x2b3   :  { %v314_v0 = vmin.f32 %v313_v5, 2.0 }
 0x2b5   :  { %v315_v6 = vmul.f32 1.442695, %v314_v0 }
 0x2b7   :  { %514 = vpow2.f32 %v315_v6 }
 0x2c1   :  { %v515_v9 = vpop.eup %514 }
 0x2c2   :  { %v318_v10 = vsel %vm317_vm2, %v515_v9, %v308_v3 }
 0x2c3   :  { %320 = vst.msk [vmem:[#allocation5] sm:$0xff] %vm319_vm3, %v318_v10 }
 0x2c4   :  { %549 = shalt.err (!%p546_p12)
}
 0x2c5   :  { %s550_s11 = scalar_lea.hbm %s771_s7, 128 }
 0x2c6   :  { %p551_p13 = scmp.ne.s32.totalorder %s771_s7, %s550_s11  ;;  %p554_p0 = scmp.lt.u32.totalorder %s550_s11, %s771_s7 }
 0x2c8   :  { %p556_p1 = pnand %p554_p0, %p551_p13 }
 0x2ca   :  { %559 = shalt.err (!%p556_p1)
}
 0x2cb   :  { %330 = dma.vmem_to_hbm [thread:$0]  %s328_s5, 128, %s771_s7, [#allocation4]  }
 0x2cc   :  { %562 = dma.done.wait [#allocation4], 128  }
 0x2cd   :  { %563 = vsyncadd [#allocation4], 4294967168 }
 0x2ce   :  { %334 = vsyncpa [#allocation3], 1 }
 0x2cf   :  { %335 = vsyncpa [#allocation4], 1 }

</bundles_post_ra>
